<compile_context>
chip_gen: v5e
topology: v5e:2x2
jax: 0.10.0
libtpu: 0.0.40
codegen_flags: <defaults>
</compile_context>

<pallas_src>
import functools

import jax
import jax.numpy as jnp
from jax import lax
from jax.experimental import pallas as pl
from jax.experimental.pallas import tpu as pltpu


def _focal_loss_kernel(logits_ref, targets_ref, out_ref, *,
                       alpha, gamma, n_rows, tile_n):
    del alpha  # alpha (and 1/N) are folded into the wrapper-side reduction.
    pid = pl.program_id(0)
    t, c = logits_ref.shape

    x = logits_ref[...].astype(jnp.float32)          # (T, C)
    tgt = targets_ref[...]                           # (T, 1) int32

    # Numerically-stable log-sum-exp along classes.
    row_max = jnp.max(x, axis=-1, keepdims=True)                       # (T, 1)
    lse = jnp.log(jnp.sum(jnp.exp(x - row_max), axis=-1, keepdims=True))  # (T, 1)

    # Target logit gathered from the raw logits (no dependency on row_max, so
    # the compare/select/reduce can co-issue with the exp/LSE chain).
    # NOTE: out-of-range targets silently contribute 0 here (no error like
    # PyTorch's CrossEntropyLoss).
    col_ids = lax.broadcasted_iota(jnp.int32, (t, c), 1)
    tgt_logit = jnp.sum(jnp.where(col_ids == tgt, x, 0.0),
                        axis=-1, keepdims=True)                         # (T, 1)

    # ce = logsumexp(logits) - logits[target]  (>= 0; clamp kills rounding NaNs)
    ce = jnp.maximum(lse + row_max - tgt_logit, 0.0)                    # (T, 1)

    # Focal modulation.  Integer gamma -> repeated multiplies (no pow).
    pt = jnp.exp(-ce)
    omp = 1.0 - pt
    if float(gamma) == float(int(gamma)) and int(gamma) >= 0:
        mod = jnp.ones_like(omp)
        for _ in range(int(gamma)):                  # gamma=2 -> omp*omp
            mod = mod * omp
    else:
        mod = jnp.power(jnp.maximum(omp, 0.0), jnp.float32(gamma))
    focal = mod * ce                                                    # (T, 1)

    # Ragged tail: only compiled when tile_n does not divide N.  The predicate
    # is automatically all-true on non-last tiles, and jnp.where does not
    # propagate NaN/Inf from the unselected (garbage overhang) rows.
    if n_rows % tile_n != 0:
        row_ids = pid * tile_n + lax.broadcasted_iota(jnp.int32, (t, 1), 0)
        focal = jnp.where(row_ids < n_rows, focal, 0.0)

    # Per-tile partial sum -> independent output blocks -> "parallel" grid axis
    # (v7x megacore) and bounded accumulation error.
    out_ref[...] = jnp.broadcast_to(jnp.sum(focal), out_ref.shape)


def _vmem_config():
    """Generation-aware (f32-equivalent logits-block budget, vmem limit)."""
    try:
        phys = int(getattr(pltpu.get_tpu_info(), "vmem_capacity_bytes", 0)) or None
    except Exception:  # CPU / interpret / older jax: fall back to v5e/v6e sizes
        phys = None
    if phys is None:
        phys = 128 * 1024 * 1024
    if phys <= 64 * 1024 * 1024:
        # v7x-class: only 64 MiB VMEM per TensorCore -> smaller blocks + limit.
        return 4 * 1024 * 1024, 40 * 1024 * 1024
    # v5e / v6e: 128 MiB physical VMEM.
    return 8 * 1024 * 1024, 64 * 1024 * 1024


def _round_tile(t, n):
    """Never let the block exceed the array in the sublane dim (except the
    always-legal single full-array block); keep 32-row granularity."""
    if t >= n:
        return n
    return max(32, (t // 32) * 32)


def focal_loss(inputs, targets, *, alpha=0.25, gamma=2.0, tile_n=None):
    """inputs: (N, C) logits (any float dtype, kept native for the HBM DMA);
    targets: (N,) integer class indices.  Returns scalar float32 mean focal
    loss (reduce=True semantics of the PyTorch module)."""
    n, c = inputs.shape
    itemsize = jnp.dtype(inputs.dtype).itemsize

    block_budget, vmem_limit = _vmem_config()
    if tile_n is None:
        # Budget in f32-equivalent bytes (in-kernel temps are f32).
        t = max(32, block_budget // max(1, c * 4))
    else:
        t = max(1, int(tile_n))
    tile_n = _round_tile(t, n)

    num_tiles = pl.cdiv(n, tile_n)
    targets_2d = targets.astype(jnp.int32).reshape(n, 1)

    kernel = functools.partial(
        _focal_loss_kernel,
        alpha=float(alpha), gamma=float(gamma), n_rows=n, tile_n=tile_n,
    )

    cost = pl.CostEstimate(
        flops=10 * n * c,
        transcendentals=n * c + 2 * n,
        bytes_accessed=n * c * itemsize + n * 4 + num_tiles * 512,
    )

    partials = pl.pallas_call(
        kernel,
        out_shape=jax.ShapeDtypeStruct((num_tiles, 1, 128), jnp.float32),
        grid=(num_tiles,),
        in_specs=[
            pl.BlockSpec((tile_n, c), lambda i: (i, 0)),
            pl.BlockSpec((tile_n, 1), lambda i: (i, 0)),
        ],
        out_specs=pl.BlockSpec((1, 1, 128), lambda i: (i, 0, 0)),
        compiler_params=pltpu.CompilerParams(
            dimension_semantics=("parallel",),
            vmem_limit_bytes=vmem_limit,
        ),
        cost_estimate=cost,
    )(inputs, targets_2d)

    # Final (tiny) reduction + alpha / mean scaling in the wrapper.
    return jnp.sum(partials[:, 0, 0]) * jnp.float32(alpha / n)


def _focal_loss_ref(inputs, targets, alpha=0.25, gamma=2.0):
    # Pure-JAX reference matching PyTorch FocalLoss.forward semantics.
    logp = jax.nn.log_softmax(inputs.astype(jnp.float32), axis=-1)
    ce = -jnp.take_along_axis(logp, targets[:, None].astype(jnp.int32), axis=-1)[:, 0]
    pt = jnp.exp(-ce)
    f = alpha * (1.0 - pt) ** gamma * ce
    return jnp.mean(f)


if __name__ == "__main__":
    # FocalLoss has no learnable parameters; alpha/gamma are fixed hyperparams.
    key = jax.random.PRNGKey(0)
    k_logits, k_targets = jax.random.split(key)

    N, C = 200, 16  # small detection-style head; tile_n=64 -> 4 tiles + ragged tail
    logits = jax.random.normal(k_logits, (N, C), dtype=jnp.float32)
    targets = jax.random.randint(k_targets, (N,), 0, C, dtype=jnp.int32)

    ref = _focal_loss_ref(logits, targets, alpha=0.25, gamma=2.0)

    # Explicit tile: exercises the multi-tile grid + in-kernel ragged mask.
    loss = focal_loss(logits, targets, alpha=0.25, gamma=2.0, tile_n=64)
    loss = jax.block_until_ready(loss)
    assert jnp.allclose(loss, ref, rtol=1e-5, atol=1e-6), (loss, ref)

    # Auto tile: byte-budgeted block collapses to a single full-array block here.
    loss2 = focal_loss(logits, targets, alpha=0.25, gamma=2.0)
    loss2 = jax.block_until_ready(loss2)
    assert jnp.allclose(loss2, ref, rtol=1e-5, atol=1e-6), (loss2, ref)

    print("KERNEL_OK")
</pallas_src>

<mosaic_0001>
module attributes {stable_mosaic.version = 11 : i64} {
  func.func @_focal_loss_kernel(%arg0: i32, %arg1: memref<64x16xf32, #tpu.memory_space<vmem>>, %arg2: memref<64x1xi32, #tpu.memory_space<vmem>>, %arg3: memref<1x1x128xf32, #tpu.memory_space<vmem>>) attributes {dimension_semantics = [#tpu.dimension_semantics<parallel>], iteration_bounds = array<i64: 4>, scalar_prefetch = 0 : i64, scratch_operands = 0 : i64, tpu.core_type = #tpu.core_type<tc>, window_params = [{transform_indices = @transform_0, window_bounds = array<i64: 64, 16>}, {transform_indices = @transform_1, window_bounds = array<i64: 64, 1>}, {transform_indices = @transform_2, window_bounds = array<i64: 1, 1, 128>}]} {
    %c0 = arith.constant 0 : index
    %c0_0 = arith.constant 0 : index
    %0 = vector.load %arg1[%c0, %c0_0] : memref<64x16xf32, #tpu.memory_space<vmem>>, vector<64x16xf32>
    %c0_1 = arith.constant 0 : index
    %c0_2 = arith.constant 0 : index
    %1 = vector.load %arg2[%c0_1, %c0_2] : memref<64x1xi32, #tpu.memory_space<vmem>>, vector<64x1xi32>
    %cst = arith.constant dense<0xFF800000> : vector<64xf32>
    %2 = vector.multi_reduction <maximumf>, %0, %cst [1] : vector<64x16xf32> to vector<64xf32>
    %3 = vector.shape_cast %2 : vector<64xf32> to vector<64x1xf32>
    %4 = vector.broadcast %3 : vector<64x1xf32> to vector<64x16xf32>
    %5 = arith.subf %0, %4 : vector<64x16xf32>
    %6 = math.exp %5 : vector<64x16xf32>
    %cst_3 = arith.constant dense<0.000000e+00> : vector<64xf32>
    %7 = vector.multi_reduction <add>, %6, %cst_3 [1] : vector<64x16xf32> to vector<64xf32>
    %8 = vector.shape_cast %7 : vector<64xf32> to vector<64x1xf32>
    %9 = math.log %8 : vector<64x1xf32>
    %10 = tpu.iota {dimensions = array<i32: 1>} : vector<64x16xi32>
    %11 = vector.broadcast %1 : vector<64x1xi32> to vector<64x16xi32>
    %12 = arith.cmpi eq, %10, %11 : vector<64x16xi32>
    %cst_4 = arith.constant 0.000000e+00 : f32
    %13 = vector.broadcast %cst_4 : f32 to vector<64x16xf32>
    %14 = arith.select %12, %0, %13 : vector<64x16xi1>, vector<64x16xf32>
    %cst_5 = arith.constant dense<0.000000e+00> : vector<64xf32>
    %15 = vector.multi_reduction <add>, %14, %cst_5 [1] : vector<64x16xf32> to vector<64xf32>
    %16 = vector.shape_cast %15 : vector<64xf32> to vector<64x1xf32>
    %17 = arith.addf %9, %3 : vector<64x1xf32>
    %18 = arith.subf %17, %16 : vector<64x1xf32>
    %cst_6 = arith.constant 0.000000e+00 : f32
    %19 = vector.broadcast %cst_6 : f32 to vector<64x1xf32>
    %20 = arith.maximumf %18, %19 : vector<64x1xf32>
    %cst_7 = arith.constant 0.000000e+00 : f32
    %21 = vector.broadcast %cst_7 : f32 to vector<64x1xf32>
    %22 = arith.subf %21, %20 : vector<64x1xf32>
    %23 = math.exp %22 : vector<64x1xf32>
    %cst_8 = arith.constant 1.000000e+00 : f32
    %24 = vector.broadcast %cst_8 : f32 to vector<64x1xf32>
    %25 = arith.subf %24, %23 : vector<64x1xf32>
    %cst_9 = arith.constant 1.000000e+00 : f32
    %26 = vector.broadcast %cst_9 : f32 to vector<64x1xf32>
    %27 = arith.mulf %26, %25 : vector<64x1xf32>
    %28 = arith.mulf %27, %25 : vector<64x1xf32>
    %29 = arith.mulf %28, %20 : vector<64x1xf32>
    %c64_i32 = arith.constant 64 : i32
    %30 = arith.muli %arg0, %c64_i32 : i32
    %31 = tpu.iota {dimensions = array<i32: 0>} : vector<64x1xi32>
    %32 = vector.broadcast %30 : i32 to vector<64x1xi32>
    %33 = arith.addi %32, %31 : vector<64x1xi32>
    %c200_i32 = arith.constant 200 : i32
    %34 = vector.broadcast %c200_i32 : i32 to vector<64x1xi32>
    %35 = arith.cmpi slt, %33, %34 : vector<64x1xi32>
    %cst_10 = arith.constant 0.000000e+00 : f32
    %36 = vector.broadcast %cst_10 : f32 to vector<64x1xf32>
    %37 = arith.select %35, %29, %36 : vector<64x1xi1>, vector<64x1xf32>
    %38 = vector.shape_cast %37 : vector<64x1xf32> to vector<1x64x1xf32>
    %cst_11 = arith.constant dense<0.000000e+00> : vector<1xf32>
    %39 = vector.multi_reduction <add>, %38, %cst_11 [1, 2] : vector<1x64x1xf32> to vector<1xf32>
    %40 = vector.shape_cast %39 : vector<1xf32> to vector<1x1x1xf32>
    %41 = vector.extract %40[0, 0, 0] : f32 from vector<1x1x1xf32>
    %42 = vector.broadcast %41 : f32 to vector<1x1x128xf32>
    %c0_12 = arith.constant 0 : index
    %c0_13 = arith.constant 0 : index
    %c0_14 = arith.constant 0 : index
    %43 = vector.load %arg3[%c0_12, %c0_13, %c0_14] : memref<1x1x128xf32, #tpu.memory_space<vmem>>, vector<1x1x128xf32>
    tpu.vector_store %arg3[%c0_12, %c0_13, %c0_14], %42 {strides = array<i32>} : memref<1x1x128xf32, #tpu.memory_space<vmem>>, vector<1x1x128xf32>,
    return
  }
  func.func @transform_0(%arg0: i32) -> (i32, i32) {
    %c0_i32 = arith.constant 0 : i32
    %c0_i32_0 = arith.constant 0 : i32
    return %arg0, %c0_i32 : i32, i32
  }
  func.func @transform_1(%arg0: i32) -> (i32, i32) {
    %c0_i32 = arith.constant 0 : i32
    %c0_i32_0 = arith.constant 0 : i32
    return %arg0, %c0_i32 : i32, i32
  }
  func.func @transform_2(%arg0: i32) -> (i32, i32, i32) {
    %c0_i32 = arith.constant 0 : i32
    %c0_i32_0 = arith.constant 0 : i32
    %c0_i32_1 = arith.constant 0 : i32
    return %arg0, %c0_i32, %c0_i32_0 : i32, i32, i32
  }
}

</mosaic_0001>

<bundles_post_ra>
// kernel: tpu_custom_call.1
= control target key start
LH: loop header
LB: loop body
LE: loop exit
PB: predicated region body
PF: predicated region fallthrough
CT: control target
= control target key end

     0   :  { %7 = vsyncpa [#allocation3], 0  ;;  %s1026_s0 = inlined_call_operand.vmem [shape: f32[200,16], index: 0, kind: input, shape index: {}]   ;;  %s1027_s1 = inlined_call_operand.vmem [shape: s32[200,1], index: 1, kind: input, shape index: {}]   ;;  %s1028_s2 = inlined_call_operand.hbm [shape: f32[4,1,128], index: 2, kind: output, shape index: {}]  }
   0x1   :  { %9 = vsyncpa [#allocation3 + $0x1], 0  ;;  %s774_s9 = smov 0   ;;  %s776_s10 = smov 0  }
   0x2   :  { %s778_s11 = smov 0   ;;  %s780_s12 = smov 0  }
   0x3 LB: > { %s795_s13 = sadd.s32 4294967295, %s756_s12   ;;  %s590_s14 = sadd.s32 4294967294, %s756_s12   ;;  %s756_s12 = sphi %s780_s12, %s1034_s12   ;;  %s752_s11 = sphi %s778_s11, %s1033_s11   ;;  %s748_s10 = sphi %s776_s10, %s1032_s10   ;;  %s744_s9 = sphi %s774_s9, %s1031_s9  }
   0x4   : > { %s799_s15 = sadd.s32 1, %s756_s12   ;;  %s74_s16 = sadd.s32 1, %s752_s11 }
   0x5   : > { %s71_s17 = ssub.s32 %s756_s12, %s799_s15  ;;  %p84_p0 = scmp.ne.s32.totalorder %s752_s11, %s748_s10 }
   0x6   : > { %p72_p1 = scmp.eq.s32.totalorder %s71_s17, 0  ;;  %p85_p2 = scmp.eq.s32.totalorder %s795_s13, 3 }
   0x7   : > { %p90_p3 = scmp.ne.s32.totalorder %s748_s10, %s744_s9  ;;  %p91_p4 = scmp.eq.s32.totalorder %s590_s14, 3 }
   0x8   : > { %s810_s18 = scalar_select %p72_p1, %s752_s11, %s74_s16  }
   0x9   : > { %p812_p5 = por %p85_p2, %p84_p0  ;;  %p816_p6 = por %p91_p4, %p90_p3 }
   0xa   : > { %p593_p7 = scmp.ge.s32.totalorder %s756_s12, 1  ;;  %p143_p8 = scmp.lt.s32.totalorder %s756_s12, 5 }
   0xc   : > { %p144_p9 = pnand %p593_p7, %p143_p8 }
   0xd   : > { %s594_s21 = sshll.u32 (!%p144_p9), %s795_s13, 3  ;;  %s598_s29 = sshll.u32 (!%p144_p9), %s795_s13, 6 }
   0xe   : > { %147 = sbr.rel (%p144_p9) target bundleno = 536 (0x218), region = 28  ;;  %p182_p10 = scmp.lt.s32.totalorder (!%p144_p9), %s594_s21, 24 }
   0xf   : > { %s175_s30 = sand.u32 (!%p144_p9), 1, %s748_s10   ;;  %s519_s5 = scalar_lea.hbm (!%p144_p9), %s1028_s2, %s795_s13 }
  0x10   : > { %s176_s6 = scalar_lea.vmem (!%p144_p9), [#allocation2], %s175_s30  ;;  %s523_s8 = sshll.u32 (!%p144_p9), %s519_s5, 4  ;;  %s524_s8 = int_to_ptr.hbm [resolvable:$true] %s523_s8 }
  0x11   : > { %s521_s7 = sshll.u32 (!%p144_p9), %s176_s6, 4  ;;  %s511_s16 = scalar_lea.sflag (!%p144_p9), [#allocation3], %s175_s30  ;;  %s522_s7 = int_to_ptr.vmem [resolvable:$true] %s521_s7 }
  0x12   : > { %s708_s17 = sshra.s32 (!%p144_p9), %s524_s8, 4  ;;  %s714_s13 = scalar_lea.hbm (!%p144_p9), %s1028_s2, 4  ;;  %s709_s17 = int_to_ptr.hbm [resolvable:$true] %s708_s17 }
  0x13   : > { %v758_v0 = vmov 0   ;;  %s1036_s21 = smov (!%p182_p10, %s594_s21), 24  ;;  %vm221_vm0 = vcmask 130048   ;;  %v310_v32 = vlaneseq  ;;  %vm483_vm11 = vcmask 7168   ;;  %p715_p0 = scmp.lt.s32.totalorder %s709_s17, %s1028_s2 }
  0x14   : > { %643 = vset.pattern.permute.xlu2 %v758_v0  ;;  %644 = vset.pattern.permute.xlu0 %v758_v0  ;;  %s595_s22 = sshll.u32 %s1036_s21, 3  ;;  %s710_s21 = scalar_lea.hbm %s709_s17, 1 }
  0x15   : > { %645 = vset.pattern.permute.xlu1 %v758_v0  ;;  %s185_s25 = scalar_lea.vmem %s1026_s0, %s595_s22  ;;  %s199_s28 = scalar_lea.vmem %s1027_s1, %s595_s22  ;;  %v879_v37 = vand.u32 127, %v310_v32 }
  0x16   : > { %v829_v1 = vld [vmem:[%s185_s25 + $0x20] sm:$0xff]  ;;  %v831_v2 = vld [vmem:[%s185_s25 + $0x10] sm:$0xff]  ;;  %v838_v7 = vld [vmem:[%s185_s25 + $0x28] sm:$0xff]  ;;  %p711_p11 = scmp.ne.s32.totalorder %s709_s17, %s710_s21  ;;  %p716_p1 = scmp.lt.s32.totalorder %s714_s13, %s710_s21 }
  0x17   : > { %v205_v3 = vld [vmem:[%s185_s25] sm:$0xff]  ;;  %v234_v4 = vsel %vm221_vm0, %v829_v1, -inf  ;;  %v228_v5 = vsel %vm221_vm0, %v831_v2, -inf  ;;  %v840_v8 = vld [vmem:[%s185_s25 + $0x18] sm:$0xff]  ;;  %v842_v9 = vld [vmem:[%s185_s25 + $0x8] sm:$0xff]  ;;  %v237_v10 = vsel %vm221_vm0, %v838_v7, -inf }
  0x18   : > { %v222_v6 = vsel %vm221_vm0, %v205_v3, -inf  ;;  %235 = vmax.xlane.f32.xlu2 %v234_v4  ;;  %229 = vmax.xlane.f32.xlu1 %v228_v5  ;;  %v231_v11 = vsel %vm221_vm0, %v840_v8, -inf  ;;  %v225_v12 = vsel %vm221_vm0, %v842_v9, -inf  ;;  %v850_v13 = vld [vmem:[%s185_s25 + $0x38] sm:$0xff]  ;;  %v852_v14 = vld [vmem:[%s185_s25 + $0x30] sm:$0xff]  ;;  %v213_v17 = vld [vmem:[%s199_s28] sm:$0xff]  ;;  %p712_p12 = pnand %p711_p11, %p812_p5  ;;  %p717_p2 = por %p716_p1, %p715_p0 }
  0x19   : > { %223 = vmax.xlane.f32.xlu0 %v222_v6  ;;  %v243_v15 = vsel %vm221_vm0, %v850_v13, -inf  ;;  %v240_v16 = vsel %vm221_vm0, %v852_v14, -inf  ;;  %v214_v18 = vld [vmem:[%s199_s28 + $0x8] sm:$0xff]  ;;  %v216_v19 = vld [vmem:[%s199_s28 + $0x18] sm:$0xff]  ;;  %v215_v20 = vld [vmem:[%s199_s28 + $0x10] sm:$0xff] }
  0x1a   : > { %v217_v21 = vld [vmem:[%s199_s28 + $0x20] sm:$0xff]  ;;  %v218_v22 = vld [vmem:[%s199_s28 + $0x28] sm:$0xff]  ;;  %v219_v23 = vld [vmem:[%s199_s28 + $0x30] sm:$0xff]  ;;  %p713_p13 = pneg %p712_p12 }
  0x1b   : > { %v220_v24 = vld [vmem:[%s199_s28 + $0x38] sm:$0xff] }
  0x1c   : > { %p718_p3 = pnand %p717_p2, %p713_p13 }
  0x20   : > { %238 = vmax.xlane.f32.xlu2 %v237_v10  ;;  %232 = vmax.xlane.f32.xlu1 %v231_v11 }
  0x21   : > { %226 = vmax.xlane.f32.xlu0 %v225_v12 }
  0x28   : > { %244 = vmax.xlane.f32.xlu1 %v243_v15 }
  0x29   : > { %241 = vmax.xlane.f32.xlu0 %v240_v16 }
  0x38   : > { %313 = vperm.xlu2 %643, %v213_v17  }
  0x3d   : > { %316 = vperm.xlu0 %644, %v214_v18  }
  0x40   : > { %322 = vperm.xlu2 %643, %v216_v19  }
  0x41   : > { %319 = vperm.xlu1 %645, %v215_v20  }
  0x48   : > { %325 = vperm.xlu2 %643, %v217_v21  }
  0x49   : > { %328 = vperm.xlu1 %645, %v218_v22  }
  0x50   : > { %331 = vperm.xlu2 %643, %v219_v23  }
  0x51   : > { %334 = vperm.xlu1 %645, %v220_v24  }
  0x8b   : > { %v861_v25 = vpop.xlane.xlu2 %235  ;;  %v863_v26 = vpop.xlane.xlu1 %229 }
  0x8c   : > { %v865_v27 = vpop.xlane.xlu0 %223  ;;  %v250_v41 = vsub.f32 %v829_v1, %v861_v25  ;;  %v248_v55 = vsub.f32 %v831_v2, %v863_v26 }
  0x8d   : > { %v246_v30 = vsub.f32 %v205_v3, %v865_v27 }
  0x8e   : > { %v262_v47 = vmul.f32 1.442695, %v250_v41  ;;  %v258_v59 = vmul.f32 1.442695, %v248_v55 }
  0x8f   : > { %v254_v36 = vmul.f32 1.442695, %v246_v30 }
  0x93   : > { %v867_v28 = vpop.xlane.xlu2 %238  ;;  %v869_v29 = vpop.xlane.xlu1 %232 }
  0x94   : > { %v872_v31 = vpop.xlane.xlu0 %226  ;;  %v249_v34 = vsub.f32 %v840_v8, %v869_v29  ;;  %v251_v0 = vsub.f32 %v838_v7, %v867_v28 }
  0x95   : > { %v247_v33 = vsub.f32 %v842_v9, %v872_v31 }
  0x96   : > { %v260_v38 = vmul.f32 1.442695, %v249_v34  ;;  %v264_v10 = vmul.f32 1.442695, %v251_v0 }
  0x97   : > { %v256_v35 = vmul.f32 1.442695, %v247_v33 }
  0x99   : > { %646 = vpow2.f32 %v256_v35 }
  0x9a   : > { %648 = vpow2.f32 %v254_v36 }
  0x9b   : > { %v314_v39 = vpop.permute.xlu2 %313  ;;  %650 = vpow2.f32 %v260_v38  ;;  %v890_v51 = vpop.xlane.xlu1 %244 }
  0x9c   : > { %vm336_vm1 = vcmp.eq.s32.totalorder %v879_v37, %v314_v39  ;;  %v882_v40 = vpop.xlane.xlu0 %241  ;;  %652 = vpow2.f32 %v262_v47  ;;  %v253_v54 = vsub.f32 %v850_v13, %v890_v51 }
  0x9d   : > { %v344_v42 = vsel %vm336_vm1, %v205_v3, 0.0  ;;  %v252_v45 = vsub.f32 %v852_v14, %v882_v40 }
  0x9e   : > { %v352_v43 = vsel %vm221_vm0, %v344_v42, 0.0  ;;  %v268_v57 = vmul.f32 1.442695, %v253_v54 }
  0x9f   : > { %v647_v44 = vpop.eup %646  ;;  %353 = vadd.xlane.f32.xlu0 %v352_v43  ;;  %v266_v50 = vmul.f32 1.442695, %v252_v45 }
  0xa0   : > { %v273_v46 = vsel %vm221_vm0, %v647_v44, 0.0  ;;  %v649_v48 = vpop.eup %648 }
  0xa1   : > { %274 = vadd.xlane.f32.xlu2 %v273_v46  ;;  %v651_v49 = vpop.eup %650  ;;  %v270_v52 = vsel %vm221_vm0, %v649_v48, 0.0  ;;  %654 = vpow2.f32 %v266_v50 }
  0xa2   : > { %v279_v53 = vsel %vm221_vm0, %v651_v49, 0.0  ;;  %v653_v56 = vpop.eup %652  ;;  %656 = vpow2.f32 %v268_v57 }
  0xa3   : > { %v323_v60 = vpop.permute.xlu2 %322  ;;  %v282_v61 = vsel %vm221_vm0, %v653_v56, 0.0  ;;  %658 = vpow2.f32 %v258_v59 }
  0xa4   : > { %660 = vpow2.f32 %v264_v10  ;;  %vm339_vm6 = vcmp.eq.s32.totalorder %v879_v37, %v323_v60 }
  0xa7   : > { %271 = vadd.xlane.f32.xlu0 %v270_v52  ;;  %v655_v58 = vpop.eup %654 }
  0xa8   : > { %v288_v63 = vsel %vm221_vm0, %v655_v58, 0.0  ;;  %v657_v6 = vpop.eup %656 }
  0xa9   : > { %280 = vadd.xlane.f32.xlu2 %v279_v53  ;;  %v659_v15 = vpop.eup %658  ;;  %v291_v17 = vsel %vm221_vm0, %v657_v6, 0.0 }
  0xaa   : > { %v661_v21 = vpop.eup %660 }
  0xab   : > { %v326_v16 = vpop.permute.xlu2 %325  ;;  %v285_v23 = vsel %vm221_vm0, %v661_v21, 0.0 }
  0xac   : > { %vm340_vm4 = vcmp.eq.s32.totalorder %v879_v37, %v326_v16 }
  0xad   : > { %v348_v19 = vsel %vm340_vm4, %v829_v1, 0.0 }
  0xae   : > { %v364_v22 = vsel %vm221_vm0, %v348_v19, 0.0 }
  0xaf   : > { %v317_v62 = vpop.permute.xlu0 %316  ;;  %283 = vadd.xlane.f32.xlu0 %v282_v61 }
  0xb0   : > { %vm337_vm2 = vcmp.eq.s32.totalorder %v879_v37, %v317_v62 }
  0xb1   : > { %289 = vadd.xlane.f32.xlu2 %v288_v63  ;;  %v345_v3 = vsel %vm337_vm2, %v842_v9, 0.0  ;;  %v276_v9 = vsel %vm221_vm0, %v659_v15, 0.0  ;;  %v940_v15 = vshrl.u32 %v310_v32, 7 }
  0xb2   : > { %v355_v4 = vsel %vm221_vm0, %v345_v3, 0.0 }
  0xb3   : > { %356 = vadd.xlane.f32.xlu1 %v355_v4  ;;  %v320_v5 = vpop.permute.xlu1 %319  ;;  %v332_v33 = vpop.permute.xlu2 %331 }
  0xb4   : > { %vm338_vm3 = vcmp.eq.s32.totalorder %v879_v37, %v320_v5  ;;  %vm342_vm8 = vcmp.eq.s32.totalorder %v879_v37, %v332_v33 }
  0xb5   : > { %v346_v11 = vsel %vm338_vm3, %v831_v2, 0.0  ;;  %v350_v35 = vsel %vm342_vm8, %v852_v14, 0.0 }
  0xb6   : > { %v358_v12 = vsel %vm221_vm0, %v346_v11, 0.0  ;;  %v370_v36 = vsel %vm221_vm0, %v350_v35, 0.0 }
  0xb7   : > { %359 = vadd.xlane.f32.xlu0 %v358_v12 }
  0xb9   : > { %292 = vadd.xlane.f32.xlu2 %v291_v17 }
  0xbb   : > { %277 = vadd.xlane.f32.xlu1 %v276_v9  ;;  %v329_v18 = vpop.permute.xlu1 %328 }
  0xbc   : > { %vm341_vm5 = vcmp.eq.s32.totalorder %v879_v37, %v329_v18 }
  0xbd   : > { %v349_v2 = vsel %vm341_vm5, %v838_v7, 0.0  ;;  %v347_v7 = vsel %vm339_vm6, %v840_v8, 0.0 }
  0xbe   : > { %v367_v20 = vsel %vm221_vm0, %v349_v2, 0.0  ;;  %v361_v34 = vsel %vm221_vm0, %v347_v7, 0.0 }
  0xbf   : > { %368 = vadd.xlane.f32.xlu0 %v367_v20 }
  0xc1   : > { %365 = vadd.xlane.f32.xlu2 %v364_v22 }
  0xc3   : > { %286 = vadd.xlane.f32.xlu1 %v285_v23  ;;  %v335_v24 = vpop.permute.xlu1 %334 }
  0xc4   : > { %vm343_vm7 = vcmp.eq.s32.totalorder %v879_v37, %v335_v24  ;;  %v451_v24 = vadd.s32 8, %v940_v15 }
  0xc5   : > { %v351_v30 = vsel %vm343_vm7, %v850_v13, 0.0 }
  0xc6   : > { %v373_v1 = vsel %vm221_vm0, %v351_v30, 0.0 }
  0xc9   : > { %374 = vadd.xlane.f32.xlu2 %v373_v1 }
  0xcb   : > { %362 = vadd.xlane.f32.xlu1 %v361_v34  ;;  %v951_v34 = vstv %s598_s29 }
  0xd3   : > { %371 = vadd.xlane.f32.xlu1 %v370_v36 }
 0x112   : > { %v354_v38 = vpop.xlane.xlu0 %353 }
 0x114   : > { %v275_v39 = vpop.xlane.xlu2 %274 }
 0x115   : > { %662 = vlog2.f32 %v275_v39 }
 0x11a   : > { %v272_v13 = vpop.xlane.xlu0 %271 }
 0x11b   : > { %664 = vlog2.f32 %v272_v13  ;;  %v663_v42 = vpop.eup %662 }
 0x11c   : > { %v281_v41 = vpop.xlane.xlu2 %280  ;;  %v297_v43 = vmul.f32 0.6931472, %v663_v42 }
 0x11e   : > { %v377_v37 = vadd.f32 %v297_v43, %v872_v31 }
 0x121   : > { %v665_v8 = vpop.eup %664 }
 0x122   : > { %v295_v44 = vmul.f32 0.6931472, %v665_v8  ;;  %v284_v45 = vpop.xlane.xlu0 %283  ;;  %v459_v8 = vadd.s32 %v951_v34, %v940_v15 }
 0x123   : > { %666 = vlog2.f32 %v284_v45 }
 0x124   : > { %v376_v46 = vadd.f32 %v295_v44, %v865_v27  ;;  %v290_v47 = vpop.xlane.xlu2 %289  ;;  %vm467_vm9 = vcmp.lt.s32.totalorder %v459_v8, 200 }
 0x126   : > { %v384_v14 = vsub.f32 %v376_v46, %v354_v38  ;;  %v357_v48 = vpop.xlane.xlu1 %356 }
 0x127   : > { %v385_v49 = vsub.f32 %v377_v37, %v357_v48  ;;  %v460_v37 = vadd.s32 %v951_v34, %v451_v24 }
 0x128   : > { %v928_v50 = vmax.f32 %v384_v14, 0.0  ;;  %v452_v14 = vadd.s32 16, %v940_v15 }
 0x129   : > { %v930_v52 = vmax.f32 %v385_v49, 0.0  ;;  %v667_v53 = vpop.eup %666  ;;  %vm468_vm10 = vcmp.lt.s32.totalorder %v460_v37, 200 }
 0x12a   : > { %v400_v55 = vsub.f32 0.0, %v928_v50  ;;  %v303_v27 = vmul.f32 0.6931472, %v667_v53  ;;  %v360_v6 = vpop.xlane.xlu0 %359  ;;  %v454_v53 = vadd.s32 32, %v940_v15 }
 0x12b   : > { %v401_v56 = vsub.f32 0.0, %v930_v52 }
 0x12c   : > { %v293_v54 = vpop.xlane.xlu2 %292  ;;  %v408_v31 = vmul.f32 1.442695, %v400_v55  ;;  %v380_v59 = vadd.f32 %v303_v27, %v861_v25 }
 0x12d   : > { %668 = vlog2.f32 %v293_v54  ;;  %v410_v58 = vmul.f32 1.442695, %v401_v56 }
 0x12e   : > { %v278_v57 = vpop.xlane.xlu1 %277  ;;  %670 = vlog2.f32 %v281_v41 }
 0x12f   : > { %672 = vlog2.f32 %v278_v57 }
 0x130   : > { %674 = vpow2.f32 %v408_v31 }
 0x131   : > { %676 = vpow2.f32 %v410_v58 }
 0x133   : > { %v669_v60 = vpop.eup %668 }
 0x134   : > { %v366_v61 = vpop.xlane.xlu2 %365  ;;  %v671_v62 = vpop.eup %670  ;;  %v309_v4 = vmul.f32 0.6931472, %v669_v60  ;;  %v461_v60 = vadd.s32 %v951_v34, %v452_v14 }
 0x135   : > { %v388_v63 = vsub.f32 %v380_v59, %v366_v61  ;;  %v673_v0 = vpop.eup %672  ;;  %v301_v11 = vmul.f32 0.6931472, %v671_v62 }
 0x136   : > { %v287_v3 = vpop.xlane.xlu1 %286  ;;  %v299_v5 = vmul.f32 0.6931472, %v673_v0  ;;  %v675_v16 = vpop.eup %674  ;;  %v383_v18 = vadd.f32 %v309_v4, %v890_v51  ;;  %v455_v0 = vadd.s32 40, %v940_v15  ;;  %vm469_vm12 = vcmp.lt.s32.totalorder %v461_v60, 200 }
 0x137   : > { %v935_v10 = vmax.f32 %v388_v63, 0.0  ;;  %678 = vlog2.f32 %v287_v3  ;;  %v677_v19 = vpop.eup %676  ;;  %v379_v23 = vadd.f32 %v301_v11, %v869_v29  ;;  %v424_v33 = vsub.f32 1.0, %v675_v16  ;;  %v369_v29 = vpop.xlane.xlu0 %368 }
 0x138   : > { %680 = vlog2.f32 %v290_v47  ;;  %v378_v12 = vadd.f32 %v299_v5, %v863_v26  ;;  %v425_v35 = vsub.f32 1.0, %v677_v19  ;;  %v463_v63 = vadd.s32 %v951_v34, %v454_v53 }
 0x139   : > { %v404_v25 = vsub.f32 0.0, %v935_v10  ;;  %v432_v45 = vmul.f32 %v424_v33, %v424_v33 }
 0x13a   : > { %v386_v17 = vsub.f32 %v378_v12, %v360_v6  ;;  %v433_v46 = vmul.f32 %v425_v35, %v425_v35  ;;  %vm471_vm13 = vcmp.lt.s32.totalorder %v463_v63, 200 }
 0x13b   : > { %v416_v9 = vmul.f32 1.442695, %v404_v25  ;;  %v440_v57 = vmul.f32 %v432_v45, %v928_v50 }
 0x13c   : > { %v375_v2 = vpop.xlane.xlu2 %374  ;;  %v944_v21 = vmax.f32 %v386_v17, 0.0  ;;  %v441_v27 = vmul.f32 %v433_v46, %v930_v52 }
 0x13d   : > { %v679_v20 = vpop.eup %678  ;;  %v391_v22 = vsub.f32 %v383_v18, %v375_v2  ;;  %682 = vpow2.f32 %v416_v9  ;;  %v475_v52 = vsel %vm467_vm9, %v440_v57, 0.0  ;;  %v457_v9 = vadd.s32 56, %v940_v15 }
 0x13e   : > { %v681_v26 = vpop.eup %680  ;;  %v305_v30 = vmul.f32 0.6931472, %v679_v20  ;;  %v363_v32 = vpop.xlane.xlu1 %362  ;;  %v402_v1 = vsub.f32 0.0, %v944_v21  ;;  %v476_v4 = vsel %vm468_vm10, %v441_v27, 0.0  ;;  %v484_v18 = vsel %vm483_vm11, %v475_v52, 0.0 }
 0x13f   : > { %v949_v7 = vmax.f32 %v391_v22, 0.0  ;;  %v387_v51 = vsub.f32 %v379_v23, %v363_v32  ;;  %v307_v38 = vmul.f32 0.6931472, %v681_v26  ;;  %v485_v19 = vsel %vm483_vm11, %v476_v4, 0.0 }
 0x140   : > { %v381_v36 = vadd.f32 %v305_v30, %v867_v28  ;;  %v412_v39 = vmul.f32 1.442695, %v402_v1  ;;  %v464_v2 = vadd.s32 %v951_v34, %v455_v0  ;;  %v456_v32 = vadd.s32 48, %v940_v15 }
 0x141   : > { %v407_v13 = vsub.f32 0.0, %v949_v7  ;;  %v955_v41 = vmax.f32 %v387_v51, 0.0  ;;  %v382_v49 = vadd.f32 %v307_v38, %v882_v40  ;;  %v453_v40 = vadd.s32 24, %v940_v15 }
 0x142   : > { %v389_v42 = vsub.f32 %v381_v36, %v369_v29  ;;  %684 = vpow2.f32 %v412_v39  ;;  %v486_v1 = vadd.f32 %v485_v19, %v484_v18  ;;  %vm472_vm15 = vcmp.lt.s32.totalorder %v464_v2, 200 }
 0x143   : > { %v422_v43 = vmul.f32 1.442695, %v407_v13  ;;  %v403_v44 = vsub.f32 0.0, %v955_v41  ;;  %v683_v28 = vpop.eup %682  ;;  %v462_v12 = vadd.s32 %v951_v34, %v453_v40  ;;  %v466_v8 = vadd.s32 %v951_v34, %v457_v9 }
 0x144   : > { %v960_v47 = vmax.f32 %v389_v42, 0.0  ;;  %v428_v31 = vsub.f32 1.0, %v683_v28  ;;  %v465_v42 = vadd.s32 %v951_v34, %v456_v32 }
 0x145   : > { %v414_v48 = vmul.f32 1.442695, %v403_v44  ;;  %686 = vpow2.f32 %v422_v43  ;;  %vm470_vm14 = vcmp.lt.s32.totalorder %v462_v12, 200  ;;  %vm474_vm1 = vcmp.lt.s32.totalorder %v466_v8, 200 }
 0x146   : > { %v405_v54 = vsub.f32 0.0, %v960_v47  ;;  %v372_v55 = vpop.xlane.xlu1 %371  ;;  %v436_v6 = vmul.f32 %v428_v31, %v428_v31  ;;  %vm473_vm0 = vcmp.lt.s32.totalorder %v465_v42, 200 }
 0x147   : > { %688 = vpow2.f32 %v414_v48  ;;  %v390_v56 = vsub.f32 %v382_v49, %v372_v55 }
 0x148   : > { %v418_v58 = vmul.f32 1.442695, %v405_v54  ;;  %v685_v59 = vpop.eup %684  ;;  %v444_v23 = vmul.f32 %v436_v6, %v935_v10 }
 0x149   : > { %v398_v61 = vmax.f32 %v390_v56, 0.0  ;;  %v426_v62 = vsub.f32 1.0, %v685_v59 }
 0x14a   : > { %690 = vpow2.f32 %v418_v58  ;;  %v479_v36 = vsel %vm471_vm13, %v444_v23, 0.0 }
 0x14b   : > { %v406_v3 = vsub.f32 0.0, %v398_v61  ;;  %v687_v50 = vpop.eup %686  ;;  %v434_v5 = vmul.f32 %v426_v62, %v426_v62 }
 0x14c   : > { %v431_v26 = vsub.f32 1.0, %v687_v50 }
 0x14d   : > { %v689_v11 = vpop.eup %688  ;;  %v420_v25 = vmul.f32 1.442695, %v406_v3  ;;  %v442_v16 = vmul.f32 %v434_v5, %v944_v21 }
 0x14e   : > { %v427_v17 = vsub.f32 1.0, %v689_v11  ;;  %v439_v38 = vmul.f32 %v431_v26, %v431_v26 }
 0x14f   : > { %692 = vpow2.f32 %v420_v25  ;;  %v477_v22 = vsel %vm469_vm12, %v442_v16, 0.0 }
 0x150   : > { %v691_v20 = vpop.eup %690  ;;  %v435_v24 = vmul.f32 %v427_v17, %v427_v17  ;;  %v487_v30 = vsel %vm483_vm11, %v477_v22, 0.0  ;;  %v447_v45 = vmul.f32 %v439_v38, %v949_v7 }
 0x151   : > { %v429_v21 = vsub.f32 1.0, %v691_v20  ;;  %v488_v35 = vadd.f32 %v487_v30, %v486_v1 }
 0x152   : > { %v443_v51 = vmul.f32 %v435_v24, %v955_v41  ;;  %v491_v41 = vsel %vm483_vm11, %v479_v36, 0.0  ;;  %v482_v48 = vsel %vm474_vm1, %v447_v45, 0.0 }
 0x153   : > { %v437_v33 = vmul.f32 %v429_v21, %v429_v21  ;;  %v497_v54 = vsel %vm483_vm11, %v482_v48, 0.0 }
 0x154   : > { %v478_v39 = vsel %vm470_vm14, %v443_v51, 0.0 }
 0x155   : > { %v693_v29 = vpop.eup %692  ;;  %v445_v10 = vmul.f32 %v437_v33, %v960_v47  ;;  %v489_v13 = vsel %vm483_vm11, %v478_v39, 0.0 }
 0x156   : > { %v490_v15 = vadd.f32 %v489_v13, %v488_v35  ;;  %v430_v43 = vsub.f32 1.0, %v693_v29 }
 0x157   : > { %v480_v44 = vsel %vm472_vm15, %v445_v10, 0.0 }
 0x158   : > { %v438_v46 = vmul.f32 %v430_v43, %v430_v43  ;;  %v492_v28 = vadd.f32 %v491_v41, %v490_v15  ;;  %v493_v37 = vsel %vm483_vm11, %v480_v44, 0.0 }
 0x15a   : > { %v446_v47 = vmul.f32 %v438_v46, %v398_v61  ;;  %v494_v49 = vadd.f32 %v493_v37, %v492_v28 }
 0x15c   : > { %v481_v14 = vsel %vm473_vm0, %v446_v47, 0.0 }
 0x15d   : > { %v495_v34 = vsel %vm483_vm11, %v481_v14, 0.0 }
 0x15e   : > { %v496_v53 = vadd.f32 %v495_v34, %v494_v49 }
 0x160   : > { %v498_v55 = vadd.f32 %v497_v54, %v496_v53 }
 0x162   : > { %499 = vadd.xlane.f32.xlu0 %v498_v55 }
 0x1d5   : > { %v500_v7 = vpop.xlane.xlu0 %499 }
 0x1d6   : > { %v501_v56 = vrot.slane %v500_v7, 4 }
 0x1d8   : > { %v502_v57 = vadd.f32 %v501_v56, %v500_v7 }
 0x1da   : > { %v503_v27 = vrot.slane %v502_v57, 2 }
 0x1dc   : > { %v504_v31 = vadd.f32 %v503_v27, %v502_v57 }
 0x1de   : > { %v505_v58 = vrot.slane %v504_v31, 1 }
 0x1e0   : > { %v506_v59 = vadd.f32 %v505_v58, %v504_v31 }
 0x1e2   : > { %601 = vpush %v506_v59 }
 0x213   : > { %s602_s14 = spop %601 }
 0x214   : > { %v508_v60 = vstv %s602_s14 }
 0x215   : > { %509 = vst [vmem:[%s176_s6] sm:$0x1] %v508_v60 }
 0x216   : > { %721 = shalt.err (!%p718_p3)
}
 0x217   : > { %603 = dma.vmem_to_hbm [thread:$0]  (%p812_p5), %s522_s7, 16, %s524_s8, %s511_s16  }
 0x218 PF: > { %p609_p4 = scmp.ge.s32.totalorder %s756_s12, 2  ;;  %s535_s26 = sand.u32 1, %s744_s9  }
 0x219   : > { %s536_s27 = scalar_lea.sflag [#allocation3], %s535_s26 }
 0x21a   : > { %p606_p7 = pnand %p609_p4, %p816_p6 }
 0x21c   : > { %p607_p8 = pneg %p606_p7 }
 0x21e   : > { %739 = dma.done.wait (%p607_p8), %s536_s27, 16  }
 0x21f   : > { %741 = vsyncadd (%p607_p8), %s536_s27, 4294967280  ;;  %p12_p9 = scmp.ge.s32.totalorder %s799_s15, 6   ;;  %s1031_s9 = smov %s748_s10 }
 0x220   : > { %s1032_s10 = smov %s752_s11  ;;  %s1033_s11 = smov %s810_s18 }
 0x221   : > { %s1034_s12 = smov %s799_s15  ;;  %14 = sbr.rel (!%p12_p9) target bundleno = 3 (0x3), region = 66 }
 0x226   :  { %541 = vsyncpa [#allocation3], 1 }
 0x227   :  { %543 = vsyncpa [#allocation3 + $0x1], 1 }

</bundles_post_ra>
